<compile_context>
chip_gen: v5e
topology: v5e:2x2
jax: 0.10.0
libtpu: 0.0.40
codegen_flags: <defaults>
</compile_context>

<pallas_src>
import functools

import jax
import jax.numpy as jnp
from jax.experimental import pallas as pl
from jax.experimental.pallas import tpu as pltpu


def _round_up(x: int, m: int) -> int:
    return ((x + m - 1) // m) * m


def _sublane_align(dtype) -> int:
    # Minimum second-minor tile per dtype: f32 -> 8, bf16/f16 -> 16, int8/fp8 -> 32.
    return {4: 8, 2: 16, 1: 32}.get(jnp.dtype(dtype).itemsize, 8)


_VMEM_BUDGET = None


def _vmem_budget_bytes() -> int:
    """Generation-aware VMEM budget: ~3/4 of physical VMEM, capped at 100 MiB."""
    global _VMEM_BUDGET
    if _VMEM_BUDGET is None:
        phys = 64 * 1024 * 1024  # conservative default (v7x per-TensorCore VMEM)
        try:
            info = pltpu.get_tpu_info()
            phys = int(getattr(info, "vmem_capacity_bytes", phys))
        except Exception:
            pass
        _VMEM_BUDGET = min((phys * 3) // 4, 100 * 1024 * 1024)
    return _VMEM_BUDGET


def _pick_tile(dim_aligned: int, target: int, align: int) -> int:
    """Tile <= target keeping pad waste <= 12.5%; falls back to `align` (zero waste)."""
    if dim_aligned <= target:
        return dim_aligned          # single block along this axis, zero waste
    t = align
    while t * 2 <= target:
        t *= 2
    while t > align:
        waste = _round_up(dim_aligned, t) - dim_aligned
        if waste * 8 <= dim_aligned:
            return t
        t //= 2
    return align                    # dim_aligned is a multiple of align -> zero waste


# ----------------------------- kernels --------------------------------------


def _linear_kernel_accum_out(x_ref, w_ref, b_ref, o_ref):
    """f32 output: accumulate straight into the resident output block (no scratch)."""
    k = pl.program_id(2)

    @pl.when(k == 0)
    def _():
        o_ref[...] = jnp.zeros_like(o_ref)

    # (tm, tk) @ (tk, tn) -> (tm, tn): standard MXU contraction, no transpose.
    o_ref[...] += jnp.dot(x_ref[...], w_ref[...], preferred_element_type=jnp.float32)

    @pl.when(k == pl.num_programs(2) - 1)
    def _():
        o_ref[...] = o_ref[...] + b_ref[...].astype(jnp.float32)


def _linear_kernel_scratch_acc(x_ref, w_ref, b_ref, o_ref, acc_ref):
    """Narrow output dtype: f32 scratch accumulator, bias + downcast at the last k."""
    k = pl.program_id(2)

    @pl.when(k == 0)
    def _():
        acc_ref[...] = jnp.zeros_like(acc_ref)

    acc_ref[...] += jnp.dot(x_ref[...], w_ref[...], preferred_element_type=jnp.float32)

    @pl.when(k == pl.num_programs(2) - 1)
    def _():
        o_ref[...] = (acc_ref[...] + b_ref[...].astype(jnp.float32)).astype(o_ref.dtype)


# --------------------------- parameter prep ----------------------------------


def init_column_parallel_linear_params(key, input_size, output_size, dtype=jnp.float32):
    """Matches the module's __init__: xavier_normal_ weight (out, in), zero bias."""
    std = (2.0 / (input_size + output_size)) ** 0.5
    weight = std * jax.random.normal(key, (output_size, input_size), dtype=dtype)
    bias = jnp.zeros((output_size,), dtype=dtype)
    return weight, bias


def prepare_column_parallel_params(weight, bias=None, *, tn_target=1024, tk_target=512,
                                   compute_dtype=None):
    """One-time weight re-layout: PyTorch (out, in) -> zero-padded (K_pad, N_pad).

    Done at init/load time so the per-call forward never transposes or pads the
    weight (a full-weight HBM round trip per call) and the kernel can use the
    standard K-major MXU contraction with no in-kernel transpose.
    Returns (w_kn_padded, bias_padded_2d, meta) with the tile sizes chosen for
    the padded layout in `meta`.
    """
    out_size, in_size = weight.shape
    if compute_dtype is not None:
        weight = weight.astype(compute_dtype)

    k_aligned = _round_up(in_size, 128)
    n_aligned = _round_up(out_size, 128)
    tk = _pick_tile(k_aligned, tk_target, 128)
    tn = _pick_tile(n_aligned, tn_target, 128)
    k_pad = _round_up(k_aligned, tk)
    n_pad = _round_up(n_aligned, tn)

    w_kn = jnp.transpose(weight)                         # (K, N)
    if (k_pad, n_pad) != (in_size, out_size):
        w_kn = jnp.pad(w_kn, ((0, k_pad - in_size), (0, n_pad - out_size)))

    if bias is None:
        bias2d = jnp.zeros((1, n_pad), dtype=w_kn.dtype)
    else:
        bias2d = bias.reshape(1, out_size)
        if n_pad != out_size:
            bias2d = jnp.pad(bias2d, ((0, 0), (0, n_pad - out_size)))

    meta = dict(in_size=in_size, out_size=out_size, tk=tk, tn=tn)
    return w_kn, bias2d, meta


# ------------------------------ forward --------------------------------------


@functools.partial(jax.jit, static_argnames=("out_size", "in_size", "tn", "tk", "tm_target"))
def column_parallel_linear(x, w_kn, bias2d, *, out_size, in_size, tn, tk, tm_target=1024):
    """y = x @ W.T + b with the weight pre-laid-out as padded (K_pad, N_pad) = w_kn."""
    assert x.shape[-1] == in_size
    lead_shape = x.shape[:-1]

    if x.dtype != w_kn.dtype:
        x = x.astype(w_kn.dtype)     # activations are cheap to cast; the weight is not
    out_dtype = x.dtype

    x2d = x.reshape(-1, in_size)
    m = x2d.shape[0]
    k_pad, n_pad = w_kn.shape

    m_align = _sublane_align(x.dtype)
    m_aligned = _round_up(m, m_align)
    tm = _pick_tile(m_aligned, tm_target, m_align)

    # ---- VMEM sizing (double-buffered inputs/output + optional acc scratch) ----
    use_scratch_acc = jnp.dtype(out_dtype).itemsize < 4
    x_b = jnp.dtype(x.dtype).itemsize
    w_b = jnp.dtype(w_kn.dtype).itemsize
    o_b = jnp.dtype(out_dtype).itemsize
    budget = _vmem_budget_bytes()

    def footprint(tm_):
        f = 2 * tm_ * tk * x_b + 2 * tk * tn * w_b + 2 * tm_ * tn * o_b + 2 * tn * 4
        if use_scratch_acc:
            f += tm_ * tn * 4
        return f

    while footprint(tm) > budget and tm > m_align:
        tm = max(m_align, _round_up(tm // 2, m_align))

    m_pad = _round_up(m_aligned, tm)

    # v7x megacore: if both parallel axes collapse to a single block, split M so the
    # second TensorCore gets work; near-zero cost on 1-TC chips at these sizes.
    if (m_pad // tm) * (n_pad // tn) == 1 and tm >= 2 * m_align:
        tm = _round_up(tm // 2, m_align)
        m_pad = _round_up(m_aligned, tm)

    if (m_pad, k_pad) != x2d.shape:
        x2d = jnp.pad(x2d, ((0, m_pad - m), (0, k_pad - in_size)))

    grid = (m_pad // tm, n_pad // tn, k_pad // tk)
    gi, gj, _ = grid

    cost = pl.CostEstimate(
        flops=2 * m_pad * n_pad * k_pad,
        transcendentals=0,
        bytes_accessed=(x_b * m_pad * k_pad * gj            # x re-streamed per N tile
                        + w_b * k_pad * n_pad * gi          # W re-streamed per M tile
                        + jnp.dtype(bias2d.dtype).itemsize * n_pad * gi
                        + o_b * m_pad * n_pad),
    )

    if use_scratch_acc:
        kernel = _linear_kernel_scratch_acc
        scratch = [pltpu.VMEM((tm, tn), jnp.float32)]
    else:
        kernel = _linear_kernel_accum_out
        scratch = []

    out = pl.pallas_call(
        kernel,
        out_shape=jax.ShapeDtypeStruct((m_pad, n_pad), out_dtype),
        grid_spec=pltpu.PrefetchScalarGridSpec(
            num_scalar_prefetch=0,
            grid=grid,
            in_specs=[
                pl.BlockSpec((tm, tk), lambda i, j, k: (i, k)),   # x tile (M, K)
                pl.BlockSpec((tk, tn), lambda i, j, k: (k, j)),   # W tile (K, N), pre-transposed
                pl.BlockSpec((1, tn), lambda i, j, k: (0, j)),    # bias tile
            ],
            out_specs=pl.BlockSpec((tm, tn), lambda i, j, k: (i, j)),
            scratch_shapes=scratch,
        ),
        compiler_params=pltpu.CompilerParams(
            dimension_semantics=("parallel", "parallel", "arbitrary"),
            vmem_limit_bytes=budget,
        ),
        cost_estimate=cost,
    )(x2d, w_kn, bias2d)

    out = out[:m, :out_size]
    return out.reshape(*lead_shape, out_size)


# ------------------------------- demo ----------------------------------------

if __name__ == "__main__":
    # Small, module-consistent shapes: batch=2, seq=8, hidden=128 -> out=256.
    batch, seq = 2, 8
    input_size, output_size = 128, 256

    key = jax.random.PRNGKey(0)
    kx, kw, kb = jax.random.split(key, 3)

    x = jax.random.normal(kx, (batch, seq, input_size), dtype=jnp.float32)
    weight, bias = init_column_parallel_linear_params(kw, input_size, output_size)

    # One-time prep (transpose + pad the weight at "init/load", not per call).
    w_kn, b2d, meta = prepare_column_parallel_params(weight, bias)
    fwd = functools.partial(column_parallel_linear,
                            out_size=meta["out_size"], in_size=meta["in_size"],
                            tn=meta["tn"], tk=meta["tk"])

    y = jax.block_until_ready(fwd(x, w_kn, b2d))
    y_ref = x @ weight.T + bias
    assert y.shape == (batch, seq, output_size)
    assert jnp.allclose(y, y_ref, atol=1e-4, rtol=1e-4)

    # Non-tile-multiple M (padding path) with a nonzero bias to exercise bias add.
    bias_nz = 0.1 * jax.random.normal(kb, (output_size,), dtype=jnp.float32)
    w_kn2, b2d2, meta2 = prepare_column_parallel_params(weight, bias_nz)
    fwd2 = functools.partial(column_parallel_linear,
                             out_size=meta2["out_size"], in_size=meta2["in_size"],
                             tn=meta2["tn"], tk=meta2["tk"])
    x_odd = jax.random.normal(kx, (3, 5, input_size), dtype=jnp.float32)
    y_odd = jax.block_until_ready(fwd2(x_odd, w_kn2, b2d2))
    assert jnp.allclose(y_odd, x_odd @ weight.T + bias_nz, atol=1e-4, rtol=1e-4)

    # bf16 path (exercises the f32 scratch-accumulator kernel + 16-row sublane align).
    w_kn_bf, b2d_bf, meta_bf = prepare_column_parallel_params(
        weight, bias, compute_dtype=jnp.bfloat16)
    fwd_bf = functools.partial(column_parallel_linear,
                               out_size=meta_bf["out_size"], in_size=meta_bf["in_size"],
                               tn=meta_bf["tn"], tk=meta_bf["tk"])
    x_bf = jax.random.normal(kx, (4, 7, input_size), dtype=jnp.bfloat16)
    y_bf = jax.block_until_ready(fwd_bf(x_bf, w_kn_bf, b2d_bf))
    y_bf_ref = (x_bf.astype(jnp.float32)
                @ weight.astype(jnp.bfloat16).astype(jnp.float32).T + bias)
    assert jnp.allclose(y_bf.astype(jnp.float32), y_bf_ref, atol=3e-2, rtol=3e-2)

    # TODO(synk): model-parallel copy/gather collectives are identity at world_size=1
    # and are not implemented as cross-chip DMA here.
    print("KERNEL_OK")
</pallas_src>

<mosaic_0001>
module attributes {stable_mosaic.version = 11 : i64} {
  func.func @_linear_kernel_accum_out(%arg0: i32, %arg1: i32, %arg2: i32, %arg3: memref<8x128xf32, #tpu.memory_space<vmem>>, %arg4: memref<128x256xf32, #tpu.memory_space<vmem>>, %arg5: memref<1x256xf32, #tpu.memory_space<vmem>>, %arg6: memref<8x256xf32, #tpu.memory_space<vmem>>) attributes {dimension_semantics = [#tpu.dimension_semantics<parallel>, #tpu.dimension_semantics<parallel>, #tpu.dimension_semantics<arbitrary>], iteration_bounds = array<i64: 2, 1, 1>, scalar_prefetch = 0 : i64, scratch_operands = 0 : i64, tpu.core_type = #tpu.core_type<tc>, window_params = [{transform_indices = @transform_0, window_bounds = array<i64: 8, 128>}, {transform_indices = @transform_1, window_bounds = array<i64: 128, 256>}, {transform_indices = @transform_2, window_bounds = array<i64: 1, 256>}, {transform_indices = @transform_3, window_bounds = array<i64: 8, 256>}]} {
    %c0_i32 = arith.constant 0 : i32
    %0 = arith.cmpi eq, %arg2, %c0_i32 : i32
    %1 = arith.extui %0 : i1 to i32
    %c0_i32_0 = arith.constant 0 : i32
    %2 = arith.cmpi ne, %1, %c0_i32_0 : i32
    scf.if %2 {
      %cst_10 = arith.constant 0.000000e+00 : f32
      %12 = vector.broadcast %cst_10 : f32 to vector<8x256xf32>
      %c0_11 = arith.constant 0 : index
      %c0_12 = arith.constant 0 : index
      %13 = vector.load %arg6[%c0_11, %c0_12] : memref<8x256xf32, #tpu.memory_space<vmem>>, vector<8x256xf32>
      tpu.vector_store %arg6[%c0_11, %c0_12], %12 {strides = array<i32>} : memref<8x256xf32, #tpu.memory_space<vmem>>, vector<8x256xf32>,
    } else {
    }
    %c0 = arith.constant 0 : index
    %c0_1 = arith.constant 0 : index
    %3 = vector.load %arg6[%c0, %c0_1] : memref<8x256xf32, #tpu.memory_space<vmem>>, vector<8x256xf32>
    %c0_2 = arith.constant 0 : index
    %c0_3 = arith.constant 0 : index
    %4 = vector.load %arg3[%c0_2, %c0_3] : memref<8x128xf32, #tpu.memory_space<vmem>>, vector<8x128xf32>
    %c0_4 = arith.constant 0 : index
    %c0_5 = arith.constant 0 : index
    %5 = vector.load %arg4[%c0_4, %c0_5] : memref<128x256xf32, #tpu.memory_space<vmem>>, vector<128x256xf32>
    %cst = arith.constant dense<0.000000e+00> : vector<8x256xf32>
    %6 = tpu.matmul %4, %5, %cst {dimension_numbers = #tpu.dot_dimension_numbers<[1], [0], [0], [1], [0, 0, 1, 1], [], []>} : vector<8x128xf32>, vector<128x256xf32>, vector<8x256xf32> -> vector<8x256xf32>
    %7 = arith.addf %3, %6 : vector<8x256xf32>
    %c0_6 = arith.constant 0 : index
    %c0_7 = arith.constant 0 : index
    %8 = vector.load %arg6[%c0_6, %c0_7] : memref<8x256xf32, #tpu.memory_space<vmem>>, vector<8x256xf32>
    tpu.vector_store %arg6[%c0_6, %c0_7], %7 {strides = array<i32>} : memref<8x256xf32, #tpu.memory_space<vmem>>, vector<8x256xf32>,
    %c0_i32_8 = arith.constant 0 : i32
    %9 = arith.cmpi eq, %arg2, %c0_i32_8 : i32
    %10 = arith.extui %9 : i1 to i32
    %c0_i32_9 = arith.constant 0 : i32
    %11 = arith.cmpi ne, %10, %c0_i32_9 : i32
    scf.if %11 {
      %c0_10 = arith.constant 0 : index
      %c0_11 = arith.constant 0 : index
      %12 = vector.load %arg6[%c0_10, %c0_11] : memref<8x256xf32, #tpu.memory_space<vmem>>, vector<8x256xf32>
      %c0_12 = arith.constant 0 : index
      %c0_13 = arith.constant 0 : index
      %13 = vector.load %arg5[%c0_12, %c0_13] : memref<1x256xf32, #tpu.memory_space<vmem>>, vector<1x256xf32>
      %14 = vector.broadcast %13 : vector<1x256xf32> to vector<8x256xf32>
      %15 = arith.addf %12, %14 : vector<8x256xf32>
      %c0_14 = arith.constant 0 : index
      %c0_15 = arith.constant 0 : index
      %16 = vector.load %arg6[%c0_14, %c0_15] : memref<8x256xf32, #tpu.memory_space<vmem>>, vector<8x256xf32>
      tpu.vector_store %arg6[%c0_14, %c0_15], %15 {strides = array<i32>} : memref<8x256xf32, #tpu.memory_space<vmem>>, vector<8x256xf32>,
    } else {
    }
    return
  }
  func.func @transform_0(%arg0: i32, %arg1: i32, %arg2: i32) -> (i32, i32) {
    %c0_i32 = arith.constant 0 : i32
    return %arg0, %arg2 : i32, i32
  }
  func.func @transform_1(%arg0: i32, %arg1: i32, %arg2: i32) -> (i32, i32) {
    %c0_i32 = arith.constant 0 : i32
    return %arg2, %arg1 : i32, i32
  }
  func.func @transform_2(%arg0: i32, %arg1: i32, %arg2: i32) -> (i32, i32) {
    %c0_i32 = arith.constant 0 : i32
    %c0_i32_0 = arith.constant 0 : i32
    return %c0_i32, %arg1 : i32, i32
  }
  func.func @transform_3(%arg0: i32, %arg1: i32, %arg2: i32) -> (i32, i32) {
    %c0_i32 = arith.constant 0 : i32
    return %arg0, %arg1 : i32, i32
  }
}

</mosaic_0001>

<bundles_post_ra>
// kernel: column_parallel_linear.1
= control target key start
LH: loop header
LB: loop body
LE: loop exit
PB: predicated region body
PF: predicated region fallthrough
CT: control target
= control target key end

     0   :  { %8 = vsyncpa [#allocation3], 0  ;;  %s910_s0 = inlined_call_operand.hbm [shape: f32[16,128], index: 0, kind: input, shape index: {}]   ;;  %s911_s1 = inlined_call_operand.hbm [shape: f32[128,256], index: 1, kind: input, shape index: {}]   ;;  %s912_s2 = inlined_call_operand.vmem [shape: f32[1,256], index: 2, kind: input, shape index: {}]   ;;  %s913_s3 = inlined_call_operand.hbm [shape: f32[16,256], index: 3, kind: output, shape index: {}]  }
   0x1   :  { %10 = vsyncpa [#allocation3 + $0x1], 0 }
   0x2   :  { %11 = vsyncpa [#allocation6], 0 }
   0x3   :  { %12 = vsyncpa [#allocation4], 0 }
   0x4   :  { %14 = vsyncpa [#allocation4 + $0x1], 0  ;;  %s760_s12 = smov 0   ;;  %s762_s13 = smov 0  }
   0x5   :  { %s764_s14 = smov 0   ;;  %s766_s15 = smov 0  }
   0x6   :  { %s768_s16 = smov 0   ;;  %s770_s17 = smov 0  }
   0x7 LB: > { %s495_s18 = sadd.s32 4294967295, %s735_s17   ;;  %p497_p0 = scmp.ge.s32.totalorder %s735_s17, 1  ;;  %s735_s17 = sphi %s770_s17, %s20_s17   ;;  %s731_s16 = sphi %s768_s16, %s924_s16   ;;  %s727_s15 = sphi %s766_s15, %s923_s15   ;;  %s723_s14 = sphi %s764_s14, %s922_s14   ;;  %s719_s13 = sphi %s762_s13, %s921_s13   ;;  %s715_s12 = sphi %s760_s12, %s920_s12  }
   0x8   : > { %p792_p1 = scmp.eq.s32.totalorder %s495_s18, 0  ;;  %p154_p2 = scmp.lt.s32.totalorder %s735_s17, 3 }
   0x9   : > { %s171_s22 = sshll.u32 %s911_s1, 4  ;;  %s737_s24 = smov [#allocation5]   ;;  %s172_s22 = int_to_ptr.hbm [resolvable:$true] %s171_s22 }
   0xa   : > { %p800_p3 = pnand %p497_p0, %p154_p2  ;;  %s173_s25 = sshll.u32 %s737_s24, 4  ;;  %s174_s25 = int_to_ptr.vmem [resolvable:$true] %s173_s25 }
   0xb   : > { %p500_p6 = scmp.ge.s32.totalorder %s735_s17, 2  ;;  %s738_s26 = smov 256  }
   0xc   : > { %p521_p4 = pneg %p800_p3  ;;  %s739_s27 = smov 16  }
   0xd   : > { %s496_s28 = sadd.s32 4294967294, %s735_s17   ;;  %s39_s29 = sadd.s32 1, %s731_s16 }
   0xe   : > { %p522_p5 = pnand %p521_p4, %p792_p1  ;;  %s48_s30 = sadd.s32 1, %s723_s14 }
   0xf   : > { %p41_p7 = scmp.ge.s32.totalorder %s39_s29, 2  ;;  %p55_p8 = scmp.ne.s32.totalorder %s723_s14, %s719_s13 }
  0x10   : > { %524 = dma.hbm_to_vmem [thread:$0]  (!%p522_p5), %s172_s22, 4096, %s174_s25, [#allocation6], %s738_s26, %s738_s26, %s739_s27  }
  0x11   : > { %p56_p9 = scmp.eq.s32.totalorder %s735_s17, 0  ;;  %p61_p10 = scmp.ne.s32.totalorder %s719_s13, %s715_s12 }
  0x12   : > { %s926_s29 = smov (%p41_p7, %s39_s29), 0  ;;  %p141_p13 = scmp.eq.s32.totalorder %s495_s18, 1 }
  0x13   : > { %p819_p11 = por %p56_p9, %p55_p8  ;;  %p825_p12 = por %p792_p1, %p61_p10 }
  0x14   : > { %s43_s6 = ssub.s32 %s731_s16, %s926_s29  ;;  %p147_p2 = scmp.eq.s32.totalorder %s496_s28, 1 }
  0x15   : > { %p46_p0 = scmp.eq.s32.totalorder %s43_s6, 0  ;;  %p831_p4 = por %p141_p13, %p55_p8 }
  0x16   : > { %p534_p5 = scmp.lt.s32.totalorder %s735_s17, 2  ;;  %p839_p7 = por %p147_p2, %p61_p10 }
  0x17   : > { %s837_s8 = scalar_select %p46_p0, %s723_s14, %s48_s30  }
  0x18   : > { %s195_s10 = sand.u32 1, %s723_s14   ;;  %s502_s20 = sshll.u32 %s731_s16, 3 }
  0x19   : > { %s501_s11 = sshll.u32 %s195_s10, 3  ;;  %s204_s18 = scalar_lea.hbm %s910_s0, %s502_s20 }
  0x1a   : > { %s199_s24 = scalar_lea.vmem [#allocation2], %s501_s11  ;;  %s206_s26 = sshll.u32 %s204_s18, 4  ;;  %s207_s26 = int_to_ptr.hbm [resolvable:$true] %s206_s26 }
  0x1b   : > { %s208_s25 = sshll.u32 %s199_s24, 4  ;;  %p526_p8 = pnand %p534_p5, %p819_p11  ;;  %s209_s25 = int_to_ptr.vmem [resolvable:$true] %s208_s25 }
  0x1c   : > { %s196_s27 = scalar_lea.sflag [#allocation3], %s195_s10  ;;  %217 = sbr.rel (%p800_p3) target bundleno = 200 (0xc8), region = 32 }
  0x1d   : > { %528 = dma.hbm_to_vmem [thread:$0]  (!%p526_p8), %s207_s26, 128, %s209_s25, %s196_s27  }
  0x1e   : > { %s853_s28 = sand.u32 (!%p800_p3), 1, %s719_s13  }
  0x1f   : > { %s504_s30 = sshll.u32 (!%p800_p3), %s853_s28, 3  ;;  %s220_s6 = scalar_lea.sflag (!%p800_p3), [#allocation3], %s853_s28 }
  0x20   : > { %s857_s11 = scalar_lea.vmem (!%p800_p3), [#allocation2], %s504_s30 }
  0x21   : > { %702 = dma.done.wait (%p825_p12), %s220_s6, 128  }
  0x22   : > { %704 = vsyncadd (%p825_p12), %s220_s6, 4294967168 }
  0x23   : > { %706 = dma.done.wait (%p792_p1), [#allocation6], 4096  }
  0x24   : > { %708 = vsyncadd (%p792_p1), [#allocation6], 4294963200  ;;  %v303_v0 = vld [vmem:[#allocation5 + $0xf0] sm:$0xff]  ;;  %v304_v1 = vld [vmem:[#allocation5 + $0xf8] sm:$0xff]  ;;  %s506_s19 = sshll.u32 %s853_s28, 4  ;;  %s512_s23 = sshll.u32 %s727_s15, 4 }
  0x25   : > { %v301_v2 = vld [vmem:[#allocation5 + $0xe0] sm:$0xff]  ;;  %305 = vmatpush.msra.mxu0 %v303_v0  ;;  %325 = vmatpush.msra.mxu1 %v304_v1  ;;  %v302_v3 = vld [vmem:[#allocation5 + $0xe8] sm:$0xff]  ;;  %v299_v4 = vld [vmem:[#allocation5 + $0xd0] sm:$0xff]  ;;  %s378_s21 = scalar_lea.hbm %s913_s3, %s512_s23  ;;  %s255_s22 = scalar_lea.vmem [#allocation7], %s506_s19 }
  0x26   : > { %v300_v5 = vld [vmem:[#allocation5 + $0xd8] sm:$0xff]  ;;  %v297_v6 = vld [vmem:[#allocation5 + $0xc0] sm:$0xff]  ;;  %v298_v7 = vld [vmem:[#allocation5 + $0xc8] sm:$0xff]  ;;  %s380_s18 = sshll.u32 %s255_s22, 4  ;;  %s382_s24 = sshll.u32 %s378_s21, 4  ;;  %s381_s18 = int_to_ptr.vmem [resolvable:$true] %s380_s18  ;;  %s383_s24 = int_to_ptr.hbm [resolvable:$true] %s382_s24 }
  0x27   : > { %306 = vmatpush.msra.mxu0 %v301_v2  ;;  %326 = vmatpush.msra.mxu1 %v302_v3  ;;  %v295_v8 = vld [vmem:[#allocation5 + $0xb0] sm:$0xff]  ;;  %v296_v9 = vld [vmem:[#allocation5 + $0xb8] sm:$0xff]  ;;  %v293_v10 = vld [vmem:[#allocation5 + $0xa0] sm:$0xff]  ;;  %s365_s15 = scalar_lea.sflag [#allocation4], %s853_s28  ;;  %s663_s25 = sshra.s32 %s383_s24, 4  ;;  %s664_s25 = int_to_ptr.hbm [resolvable:$true] %s663_s25 }
  0x28   : > { %v294_v11 = vld [vmem:[#allocation5 + $0xa8] sm:$0xff]  ;;  %v291_v12 = vld [vmem:[#allocation5 + $0x90] sm:$0xff]  ;;  %v292_v13 = vld [vmem:[#allocation5 + $0x98] sm:$0xff]  ;;  %s665_s26 = scalar_lea.hbm %s664_s25, 16  ;;  %s669_s6 = scalar_lea.hbm %s913_s3, 32 }
  0x29   : > { %307 = vmatpush.msra.mxu0 %v299_v4  ;;  %327 = vmatpush.msra.mxu1 %v300_v5  ;;  %v289_v14 = vld [vmem:[#allocation5 + $0x80] sm:$0xff]  ;;  %v290_v15 = vld [vmem:[#allocation5 + $0x88] sm:$0xff]  ;;  %v287_v16 = vld [vmem:[#allocation5 + $0x70] sm:$0xff]  ;;  %p666_p1 = scmp.ne.s32.totalorder %s664_s25, %s665_s26  ;;  %p670_p10 = scmp.lt.s32.totalorder %s664_s25, %s913_s3 }
  0x2a   : > { %v288_v17 = vld [vmem:[#allocation5 + $0x78] sm:$0xff]  ;;  %v285_v18 = vld [vmem:[#allocation5 + $0x60] sm:$0xff]  ;;  %v286_v19 = vld [vmem:[#allocation5 + $0x68] sm:$0xff]  ;;  %p671_p11 = scmp.lt.s32.totalorder %s669_s6, %s665_s26 }
  0x2b   : > { %308 = vmatpush.msra.mxu0 %v297_v6  ;;  %328 = vmatpush.msra.mxu1 %v298_v7  ;;  %v283_v20 = vld [vmem:[#allocation5 + $0x50] sm:$0xff]  ;;  %v284_v21 = vld [vmem:[#allocation5 + $0x58] sm:$0xff]  ;;  %v281_v22 = vld [vmem:[#allocation5 + $0x40] sm:$0xff]  ;;  %p667_p3 = pnand %p666_p1, %p831_p4 }
  0x2c   : > { %v282_v23 = vld [vmem:[#allocation5 + $0x48] sm:$0xff]  ;;  %v279_v24 = vld [vmem:[#allocation5 + $0x30] sm:$0xff]  ;;  %v280_v25 = vld [vmem:[#allocation5 + $0x38] sm:$0xff]  ;;  %p672_p12 = por %p671_p11, %p670_p10 }
  0x2d   : > { %309 = vmatpush.msra.mxu0 %v295_v8  ;;  %329 = vmatpush.msra.mxu1 %v296_v9  ;;  %v277_v26 = vld [vmem:[#allocation5 + $0x20] sm:$0xff]  ;;  %v278_v27 = vld [vmem:[#allocation5 + $0x28] sm:$0xff]  ;;  %v275_v28 = vld [vmem:[#allocation5 + $0x10] sm:$0xff]  ;;  %p668_p9 = pneg %p667_p3 }
  0x2e   : > { %v276_v29 = vld [vmem:[#allocation5 + $0x18] sm:$0xff]  ;;  %v273_v30 = vld [vmem:[#allocation5] sm:$0xff]  ;;  %v274_v31 = vld [vmem:[#allocation5 + $0x8] sm:$0xff] }
  0x2f   : > { %310 = vmatpush.msra.mxu0 %v293_v10  ;;  %330 = vmatpush.msra.mxu1 %v294_v11  ;;  %v272_v32 = vld [vmem:[%s857_s11] sm:$0xff]  ;;  %p673_p13 = pnand %p672_p12, %p668_p9 }
  0x30   : > { %v354_v33 = vld [vmem:[%s912_s2] sm:$0x3] }
  0x31   : > { %311 = vmatpush.msra.mxu0 %v291_v12  ;;  %331 = vmatpush.msra.mxu1 %v292_v13  ;;  %v356_v34 = vperm.slane %v354_v33, 0  ;;  %v357_v35 = vperm.slane %v354_v33, 1 }
  0x33   : > { %312 = vmatpush.msra.mxu0 %v289_v14  ;;  %332 = vmatpush.msra.mxu1 %v290_v15 }
  0x35   : > { %313 = vmatpush.msra.mxu0 %v287_v16  ;;  %333 = vmatpush.msra.mxu1 %v288_v17 }
  0x37   : > { %314 = vmatpush.msra.mxu0 %v285_v18  ;;  %334 = vmatpush.msra.mxu1 %v286_v19 }
  0x39   : > { %315 = vmatpush.msra.mxu0 %v283_v20  ;;  %335 = vmatpush.msra.mxu1 %v284_v21 }
  0x3b   : > { %316 = vmatpush.msra.mxu0 %v281_v22  ;;  %336 = vmatpush.msra.mxu1 %v282_v23 }
  0x3d   : > { %317 = vmatpush.msra.mxu0 %v279_v24  ;;  %337 = vmatpush.msra.mxu1 %v280_v25 }
  0x3f   : > { %318 = vmatpush.msra.mxu0 %v277_v26  ;;  %338 = vmatpush.msra.mxu1 %v278_v27 }
  0x41   : > { %319 = vmatpush.msra.mxu0 %v275_v28  ;;  %339 = vmatpush.msra.mxu1 %v276_v29 }
  0x43   : > { %320 = vmatpush.msra.mxu0 %v273_v30  ;;  %340 = vmatpush.msra.mxu1 %v274_v31 }
  0x44   : > { %321 = vmatmul.f32.vlgmr.msra.gmra.mxu0 %v272_v32  ;;  %341 = vmatmul.f32.vlgmr.msra.gmra.mxu1 %v272_v32 }
  0xc1   : > { %v322_v36 = vpop.f32.mrf.mxu0  ;;  %v342_v37 = vpop.f32.mrf.mxu1 }
  0xc2   : > { %v360_v38 = vadd.f32 %v356_v34, %v322_v36  ;;  %v361_v39 = vadd.f32 %v357_v35, %v342_v37 }
  0xc4   : > { %362 = vst [vmem:[%s255_s22] sm:$0xff] %v360_v38 }
  0xc5   : > { %363 = vst [vmem:[%s255_s22 + $0x8] sm:$0xff] %v361_v39 }
  0xc6   : > { %676 = shalt.err (!%p673_p13)
}
  0xc7   : > { %519 = dma.vmem_to_hbm [thread:$0]  (%p831_p4), %s381_s18, 256, %s383_s24, %s365_s15  }
  0xc8 PF: > { %s394_s28 = sand.u32 1, %s715_s12   ;;  %p530_p0 = pnand %p500_p6, %p839_p7 }
  0xc9   : > { %s395_s23 = scalar_lea.sflag [#allocation4], %s394_s28 }
  0xca   : > { %p531_p2 = pneg %p530_p0 }
  0xcc   : > { %710 = dma.done.wait (%p531_p2), %s395_s23, 256  }
  0xcd   : > { %712 = vsyncadd (%p531_p2), %s395_s23, 4294967040  ;;  %s20_s17 = sadd.s32 1, %s735_s17   ;;  %s920_s12 = smov %s719_s13 }
  0xce   : > { %p17_p5 = scmp.ge.s32.totalorder %s20_s17, 4   ;;  %s921_s13 = smov %s723_s14 }
  0xcf   : > { %s922_s14 = smov %s837_s8  ;;  %s923_s15 = smov %s731_s16 }
  0xd0   : > { %s924_s16 = smov %s926_s29  ;;  %19 = sbr.rel (!%p17_p5) target bundleno = 7 (0x7), region = 93 }
  0xd5   :  { %401 = vsyncpa [#allocation3], 1 }
  0xd6   :  { %403 = vsyncpa [#allocation3 + $0x1], 1 }
  0xd7   :  { %404 = vsyncpa [#allocation6], 1 }
  0xd8   :  { %405 = vsyncpa [#allocation4], 1 }
  0xd9   :  { %407 = vsyncpa [#allocation4 + $0x1], 1 }

</bundles_post_ra>
